<compile_context>
chip_gen: v7x
topology: tpu7x:2x2x1
jax: 0.10.0
libtpu: 0.0.40
codegen_flags: <defaults>
</compile_context>

<pallas_src>
import jax
import jax.numpy as jnp
from jax.experimental import pallas as pl
from jax.experimental.pallas import tpu as pltpu


def _cond_ff_kernel(x_ref, w1_ref, w3_ref, w2_ref, o_ref, acc_ref):
    """One (expert, I-tile) step.

    x_ref  : (T, D)       shared activations
    w1_ref : (1, D, TI)   up-proj tile   (pre-transposed)
    w3_ref : (1, D, TI)   gate-proj tile (pre-transposed)
    w2_ref : (1, TI, D)   down-proj tile (pre-transposed)
    o_ref  : (1, T, D)    per-expert output block
    acc_ref: (T, D) f32   persistent accumulator over the I axis
    """
    i = pl.program_id(1)

    @pl.when(i == 0)
    def _():
        acc_ref[...] = jnp.zeros_like(acc_ref)

    x = x_ref[...]
    w1 = w1_ref[0]
    w3 = w3_ref[0]
    w2 = w2_ref[0]

    # Up / gate projections for this slice of the intermediate dim: (T, TI).
    h1 = jnp.dot(x, w1, preferred_element_type=jnp.float32)
    h1 = h1 * jax.nn.sigmoid(h1)                      # SiLU
    h3 = jnp.dot(x, w3, preferred_element_type=jnp.float32)

    # Cast the gated activation to the weight dtype so the down-projection
    # runs at full MXU rate; accumulate in the f32 scratch.
    h = (h1 * h3).astype(w2.dtype)
    acc_ref[...] += jnp.dot(h, w2, preferred_element_type=jnp.float32)

    @pl.when(i == pl.num_programs(1) - 1)
    def _():
        o_ref[0] = acc_ref[...].astype(o_ref.dtype)


def _round_up(v, m):
    return (v + m - 1) // m * m


def _pick_ti(i_pad, d_pad, weight_itemsize, budget_bytes=48 * 1024 * 1024):
    """Largest I-tile whose double-buffered weight tiles fit the VMEM budget.

    Per buffer: w1(D,TI) + w3(D,TI) + w2(TI,D) = 3*D*TI elems; x2 for
    double-buffering.  Budget leaves headroom for x / acc / output on v7x
    (64 MiB physical VMEM) as well as v5e/v6e.
    """
    best = 128
    ti = 128
    while ti <= i_pad:
        if 2 * 3 * d_pad * ti * weight_itemsize <= budget_bytes:
            best = ti
        ti += 128
    best = min(best, i_pad)
    if best >= 256:
        best -= best % 256    # prefer multiples of 256 for the v6e/v7x MXU
    return max(best, 128)


def conditional_feed_forward(x, expert_indices, w1, w2, w3, *, ti=None):
    """x: (T, D), expert_indices: (T, A) int32 -> (T, A, D)."""
    T, D = x.shape
    E, I, _ = w1.shape

    out_dtype = x.dtype
    w_itemsize = jnp.dtype(w1.dtype).itemsize

    # TPU-friendly padding: lanes (last dims) to 128, sublanes to 8.
    t_pad = _round_up(T, 8)
    d_pad = _round_up(D, 128)
    i128 = _round_up(I, 128)
    if ti is None:
        ti = _pick_ti(i128, d_pad, w_itemsize)
    ti = min(ti, i128)
    i_pad = _round_up(I, ti)
    n_i = i_pad // ti

    # Pre-transpose weights once so every in-kernel matmul is canonical
    # (M, K) @ (K, N).
    w1t = jnp.swapaxes(w1, 1, 2)   # (E, D, I)
    w3t = jnp.swapaxes(w3, 1, 2)   # (E, D, I)
    w2t = jnp.swapaxes(w2, 1, 2)   # (E, I, D)

    if (t_pad, d_pad) != (T, D):
        x = jnp.pad(x, ((0, t_pad - T), (0, d_pad - D)))
    if (d_pad, i_pad) != (D, I):
        w1t = jnp.pad(w1t, ((0, 0), (0, d_pad - D), (0, i_pad - I)))
        w3t = jnp.pad(w3t, ((0, 0), (0, d_pad - D), (0, i_pad - I)))
        w2t = jnp.pad(w2t, ((0, 0), (0, i_pad - I), (0, d_pad - D)))

    # Advisory cost estimate: 3 matmuls per expert + sigmoid, plus weight /
    # activation / output HBM traffic.
    cost = pl.CostEstimate(
        flops=6 * E * t_pad * i_pad * d_pad,
        transcendentals=E * t_pad * i_pad,
        bytes_accessed=(3 * E * i_pad * d_pad * w_itemsize
                        + t_pad * d_pad * jnp.dtype(x.dtype).itemsize
                        + E * t_pad * d_pad * jnp.dtype(out_dtype).itemsize),
    )

    # VMEM budget: x + f32 acc + double-buffered weight tiles + output block.
    vmem_bytes = int(
        t_pad * d_pad * (jnp.dtype(x.dtype).itemsize + 4)
        + 2 * (3 * d_pad * ti * w_itemsize)
        + 2 * t_pad * d_pad * jnp.dtype(out_dtype).itemsize)
    vmem_limit = min(max(2 * vmem_bytes, 32 * 1024 * 1024), 100 * 1024 * 1024)

    dense = pl.pallas_call(
        _cond_ff_kernel,
        out_shape=jax.ShapeDtypeStruct((E, t_pad, d_pad), out_dtype),
        grid_spec=pltpu.PrefetchScalarGridSpec(
            num_scalar_prefetch=0,
            grid=(E, n_i),                                          # I last (reduction)
            in_specs=[
                pl.BlockSpec((t_pad, d_pad), lambda e, i: (0, 0)),      # x (shared)
                pl.BlockSpec((1, d_pad, ti), lambda e, i: (e, 0, i)),   # w1^T tile
                pl.BlockSpec((1, d_pad, ti), lambda e, i: (e, 0, i)),   # w3^T tile
                pl.BlockSpec((1, ti, d_pad), lambda e, i: (e, i, 0)),   # w2^T tile
            ],
            out_specs=pl.BlockSpec((1, t_pad, d_pad), lambda e, i: (e, 0, 0)),
            scratch_shapes=[pltpu.VMEM((t_pad, d_pad), jnp.float32)],
        ),
        compiler_params=pltpu.CompilerParams(
            dimension_semantics=("parallel", "arbitrary"),
            vmem_limit_bytes=vmem_limit),
        cost_estimate=cost,
    )(x, w1t, w3t, w2t)                                             # (E, T', D')

    dense = dense[:, :T, :D]                                        # strip padding
    # Gather straight off the (E, T, D) layout — no (T, E, D) transpose pass.
    seq = jnp.arange(T, dtype=jnp.int32)[:, None]                   # (T, 1)
    return dense[expert_indices.astype(jnp.int32), seq]             # (T, A, D)


if __name__ == "__main__":
    # Small but lane-dense config (last dims multiples of 128 -> unmasked
    # stores, non-trivial I tiling with TI=128 -> grid (E, 2)).
    num_experts = 4
    dim = 128
    intermediate_size = 256
    seq_len = 8           # >= 4 -> PyTorch would take the long-seq branch
    num_activated = 2

    key = jax.random.PRNGKey(0)
    k_w1, k_w2, k_w3, k_x, k_idx = jax.random.split(key, 5)

    w1 = jax.random.normal(k_w1, (num_experts, intermediate_size, dim),
                           dtype=jnp.float32) * 0.05
    w2 = jax.random.normal(k_w2, (num_experts, dim, intermediate_size),
                           dtype=jnp.float32) * 0.05
    w3 = jax.random.normal(k_w3, (num_experts, intermediate_size, dim),
                           dtype=jnp.float32) * 0.05

    x = jax.random.normal(k_x, (seq_len, dim), dtype=jnp.float32)
    expert_indices = jax.random.randint(
        k_idx, (seq_len, num_activated), 0, num_experts, dtype=jnp.int32)

    out = conditional_feed_forward(x, expert_indices, w1, w2, w3, ti=128)
    out = jax.block_until_ready(out)

    # Pure-JAX reference (mirrors forward_for_long_seq_len).
    x1 = jax.nn.silu(jnp.einsum('td,eod->teo', x, w1))
    x3 = jnp.einsum('td,eod->teo', x, w3)
    ref = jnp.einsum('teo,edo->ted', x1 * x3, w2)
    ref = jnp.take_along_axis(ref, expert_indices[:, :, None], axis=1)

    assert out.shape == (seq_len, num_activated, dim)
    assert jnp.allclose(out, ref, atol=2e-4, rtol=2e-4)
    print("KERNEL_OK")
</pallas_src>

<mosaic_0001>
module attributes {stable_mosaic.version = 11 : i64} {
  func.func @_cond_ff_kernel(%arg0: i32, %arg1: i32, %arg2: memref<8x128xf32, #tpu.memory_space<vmem>>, %arg3: memref<1x128x128xf32, #tpu.memory_space<vmem>>, %arg4: memref<1x128x128xf32, #tpu.memory_space<vmem>>, %arg5: memref<1x128x128xf32, #tpu.memory_space<vmem>>, %arg6: memref<1x8x128xf32, #tpu.memory_space<vmem>>, %arg7: memref<8x128xf32, #tpu.memory_space<vmem>>) attributes {dimension_semantics = [#tpu.dimension_semantics<parallel>, #tpu.dimension_semantics<arbitrary>], iteration_bounds = array<i64: 4, 2>, scalar_prefetch = 0 : i64, scratch_operands = 1 : i64, tpu.core_type = #tpu.core_type<tc>, window_params = [{pipeline_mode = #tpu.pipeline_mode<synchronous>, transform_indices = @transform_0, window_bounds = array<i64: 8, 128>}, {transform_indices = @transform_1, window_bounds = array<i64: 1, 128, 128>}, {transform_indices = @transform_2, window_bounds = array<i64: 1, 128, 128>}, {transform_indices = @transform_3, window_bounds = array<i64: 1, 128, 128>}, {transform_indices = @transform_4, window_bounds = array<i64: 1, 8, 128>}]} {
    %c0_i32 = arith.constant 0 : i32
    %0 = arith.cmpi eq, %arg1, %c0_i32 : i32
    %1 = arith.extui %0 : i1 to i32
    %c0_i32_0 = arith.constant 0 : i32
    %2 = arith.cmpi ne, %1, %c0_i32_0 : i32
    scf.if %2 {
      %cst_19 = arith.constant 0.000000e+00 : f32
      %26 = vector.broadcast %cst_19 : f32 to vector<8x128xf32>
      %c0_20 = arith.constant 0 : index
      %c0_21 = arith.constant 0 : index
      %27 = vector.load %arg7[%c0_20, %c0_21] : memref<8x128xf32, #tpu.memory_space<vmem>>, vector<8x128xf32>
      tpu.vector_store %arg7[%c0_20, %c0_21], %26 {strides = array<i32>} : memref<8x128xf32, #tpu.memory_space<vmem>>, vector<8x128xf32>,
    } else {
    }
    %c0 = arith.constant 0 : index
    %c0_1 = arith.constant 0 : index
    %3 = vector.load %arg2[%c0, %c0_1] : memref<8x128xf32, #tpu.memory_space<vmem>>, vector<8x128xf32>
    %c0_2 = arith.constant 0 : index
    %c0_3 = arith.constant 0 : index
    %c0_4 = arith.constant 0 : index
    %4 = vector.load %arg3[%c0_2, %c0_3, %c0_4] : memref<1x128x128xf32, #tpu.memory_space<vmem>>, vector<1x128x128xf32>
    %5 = vector.shape_cast %4 : vector<1x128x128xf32> to vector<128x128xf32>
    %c0_5 = arith.constant 0 : index
    %c0_6 = arith.constant 0 : index
    %c0_7 = arith.constant 0 : index
    %6 = vector.load %arg4[%c0_5, %c0_6, %c0_7] : memref<1x128x128xf32, #tpu.memory_space<vmem>>, vector<1x128x128xf32>
    %7 = vector.shape_cast %6 : vector<1x128x128xf32> to vector<128x128xf32>
    %c0_8 = arith.constant 0 : index
    %c0_9 = arith.constant 0 : index
    %c0_10 = arith.constant 0 : index
    %8 = vector.load %arg5[%c0_8, %c0_9, %c0_10] : memref<1x128x128xf32, #tpu.memory_space<vmem>>, vector<1x128x128xf32>
    %9 = vector.shape_cast %8 : vector<1x128x128xf32> to vector<128x128xf32>
    %cst = arith.constant dense<0.000000e+00> : vector<8x128xf32>
    %10 = tpu.matmul %3, %5, %cst {dimension_numbers = #tpu.dot_dimension_numbers<[1], [0], [0], [1], [0, 0, 1, 1], [], []>} : vector<8x128xf32>, vector<128x128xf32>, vector<8x128xf32> -> vector<8x128xf32>
    %11 = arith.negf %10 : vector<8x128xf32>
    %12 = math.exp %11 : vector<8x128xf32>
    %cst_11 = arith.constant 1.000000e+00 : f32
    %13 = vector.broadcast %cst_11 : f32 to vector<8x128xf32>
    %14 = arith.addf %13, %12 : vector<8x128xf32>
    %15 = arith.divf %13, %14 : vector<8x128xf32>
    %16 = arith.mulf %10, %15 : vector<8x128xf32>
    %cst_12 = arith.constant dense<0.000000e+00> : vector<8x128xf32>
    %17 = tpu.matmul %3, %7, %cst_12 {dimension_numbers = #tpu.dot_dimension_numbers<[1], [0], [0], [1], [0, 0, 1, 1], [], []>} : vector<8x128xf32>, vector<128x128xf32>, vector<8x128xf32> -> vector<8x128xf32>
    %18 = arith.mulf %16, %17 : vector<8x128xf32>
    %c0_13 = arith.constant 0 : index
    %c0_14 = arith.constant 0 : index
    %19 = vector.load %arg7[%c0_13, %c0_14] : memref<8x128xf32, #tpu.memory_space<vmem>>, vector<8x128xf32>
    %cst_15 = arith.constant dense<0.000000e+00> : vector<8x128xf32>
    %20 = tpu.matmul %18, %9, %cst_15 {dimension_numbers = #tpu.dot_dimension_numbers<[1], [0], [0], [1], [0, 0, 1, 1], [], []>} : vector<8x128xf32>, vector<128x128xf32>, vector<8x128xf32> -> vector<8x128xf32>
    %21 = arith.addf %19, %20 : vector<8x128xf32>
    %c0_16 = arith.constant 0 : index
    %c0_17 = arith.constant 0 : index
    %22 = vector.load %arg7[%c0_16, %c0_17] : memref<8x128xf32, #tpu.memory_space<vmem>>, vector<8x128xf32>
    tpu.vector_store %arg7[%c0_16, %c0_17], %21 {strides = array<i32>} : memref<8x128xf32, #tpu.memory_space<vmem>>, vector<8x128xf32>,
    %c1_i32 = arith.constant 1 : i32
    %23 = arith.cmpi eq, %arg1, %c1_i32 : i32
    %24 = arith.extui %23 : i1 to i32
    %c0_i32_18 = arith.constant 0 : i32
    %25 = arith.cmpi ne, %24, %c0_i32_18 : i32
    scf.if %25 {
      %c0_19 = arith.constant 0 : index
      %c0_20 = arith.constant 0 : index
      %26 = vector.load %arg7[%c0_19, %c0_20] : memref<8x128xf32, #tpu.memory_space<vmem>>, vector<8x128xf32>
      %c0_21 = arith.constant 0 : index
      %c0_22 = arith.constant 0 : index
      %c0_23 = arith.constant 0 : index
      %27 = vector.load %arg6[%c0_21, %c0_22, %c0_23] : memref<1x8x128xf32, #tpu.memory_space<vmem>>, vector<1x8x128xf32>
      %28 = vector.shape_cast %27 : vector<1x8x128xf32> to vector<8x128xf32>
      %29 = vector.shape_cast %26 : vector<8x128xf32> to vector<1x8x128xf32>
      tpu.vector_store %arg6[%c0_21, %c0_22, %c0_23], %29 {strides = array<i32>} : memref<1x8x128xf32, #tpu.memory_space<vmem>>, vector<1x8x128xf32>,
    } else {
    }
    return
  }
  func.func @transform_0(%arg0: i32, %arg1: i32) -> (i32, i32) {
    %c0_i32 = arith.constant 0 : i32
    %c0_i32_0 = arith.constant 0 : i32
    %c0_i32_1 = arith.constant 0 : i32
    return %c0_i32, %c0_i32_0 : i32, i32
  }
  func.func @transform_1(%arg0: i32, %arg1: i32) -> (i32, i32, i32) {
    %c0_i32 = arith.constant 0 : i32
    %c0_i32_0 = arith.constant 0 : i32
    return %arg0, %c0_i32, %arg1 : i32, i32, i32
  }
  func.func @transform_2(%arg0: i32, %arg1: i32) -> (i32, i32, i32) {
    %c0_i32 = arith.constant 0 : i32
    %c0_i32_0 = arith.constant 0 : i32
    return %arg0, %c0_i32, %arg1 : i32, i32, i32
  }
  func.func @transform_3(%arg0: i32, %arg1: i32) -> (i32, i32, i32) {
    %c0_i32 = arith.constant 0 : i32
    %c0_i32_0 = arith.constant 0 : i32
    return %arg0, %arg1, %c0_i32 : i32, i32, i32
  }
  func.func @transform_4(%arg0: i32, %arg1: i32) -> (i32, i32, i32) {
    %c0_i32 = arith.constant 0 : i32
    %c0_i32_0 = arith.constant 0 : i32
    %c0_i32_1 = arith.constant 0 : i32
    return %arg0, %c0_i32, %c0_i32_0 : i32, i32, i32
  }
}

</mosaic_0001>

<bundles_post_ra>
// kernel: tpu_custom_call.1
= control target key start
LH: loop header
LB: loop body
LE: loop exit
PB: predicated region body
PF: predicated region fallthrough
CT: control target
= control target key end

     0   :  { %s1906_s0 = inlined_call_operand.hbm [shape: f32[8,128], index: 0, kind: input, shape index: {}]   ;;  %s1907_s1 = inlined_call_operand.hbm [shape: f32[4,128,256], index: 1, kind: input, shape index: {}]   ;;  %s1908_s2 = inlined_call_operand.hbm [shape: f32[4,128,256], index: 2, kind: input, shape index: {}]   ;;  %s1909_s3 = inlined_call_operand.hbm [shape: f32[4,256,128], index: 3, kind: input, shape index: {}]   ;;  %s1910_s4 = inlined_call_operand.hbm [shape: f32[4,8,128], index: 4, kind: output, shape index: {}]  }
   0x1   :  { %1935 = sst [smem:[#allocation25_spill]] %s1907_s1 }
   0x2   :  { %1936 = sst [smem:[#allocation26_spill]] %s1908_s2 }
   0x3   :  { %1937 = sst [smem:[#allocation27_spill]] %s1910_s4 }
   0x4   :  { %9 = vsyncpa [#allocation4], 0 }
   0x5   :  { %10 = vsyncpa [#allocation7], 0 }
   0x6   :  { %12 = vsyncpa [#allocation7 + $0x1], 0 }
   0x7   :  { %13 = vsyncpa [#allocation10], 0 }
   0x8   :  { %15 = vsyncpa [#allocation10 + $0x1], 0 }
   0x9   :  { %16 = vsyncpa [#allocation5], 0 }
   0xa   :  { %18 = vsyncpa [#allocation5 + $0x1], 0  ;;  %s1444_s15 = smov 0   ;;  %s1446_s16 = smov 0  }
   0xb   :  { %s1448_s17 = smov 0   ;;  %s1450_s18 = smov 0  }
   0xc   :  { %s1452_s19 = smov 0   ;;  %s1454_s20 = smov 0  }
   0xd   :  { %s1456_s21 = smov 0   ;;  %s1458_s22 = smov 0  }
   0xe   :  { %s1460_s23 = smov 0   ;;  %s1462_s24 = smov 0  }
   0xf   :  { %s1464_s25 = smov 0  }
  0x10 LB: > { %1938 = sst [smem:[#allocation16_spill]] %s1365_s15  ;;  %s33_s26 = sadd.s32 1, %s1397_s23  ;;  %s1405_s25 = sphi %s1464_s25, %s24_s25   ;;  %s1401_s24 = sphi %s1462_s24, %s1991_s24   ;;  %s1397_s23 = sphi %s1460_s23, %s1990_s23   ;;  %s1393_s22 = sphi %s1458_s22, %s1989_s22   ;;  %s1389_s21 = sphi %s1456_s21, %s1988_s21   ;;  %s1385_s20 = sphi %s1454_s20, %s1987_s20   ;;  %s1381_s19 = sphi %s1452_s19, %s1986_s19   ;;  %s1377_s18 = sphi %s1450_s18, %s1985_s18   ;;  %s1373_s17 = sphi %s1448_s17, %s1979_s17   ;;  %s1369_s16 = sphi %s1446_s16, %s1984_s16   ;;  %s1365_s15 = sphi %s1444_s15, %s1983_s15  }
  0x11   : > { %1939 = sst [smem:[#allocation17_spill]] %s1373_s17  ;;  %s36_s27 = sadd.s32 1, %s1401_s24 }
  0x12   : > { %1940 = sst [smem:[#allocation18_spill]] %s1393_s22  ;;  %p34_p0 = scmp.ge.s32.totalorder %s33_s26, 2 }
  0x13   : > { %1941 = sst [smem:[#allocation19_spill]] %s1405_s25  ;;  %s66_s28 = sadd.s32 1, %s1385_s20 }
  0x14   : > { %p73_p1 = scmp.ne.s32.totalorder %s1385_s20, %s1381_s19  ;;  %p74_p2 = scmp.eq.s32.totalorder %s1405_s25, 0 }
  0x15   : > { %s1993_s26 = smov (%p34_p0, %s33_s26), 0  ;;  %s1995_s27 = smov (!%p34_p0, %s36_s27), %s1401_s24 }
  0x16   : > { %1942 = sst [smem:[#allocation20_spill]] %s1993_s26  ;;  %s62_s29 = ssub.s32 %s1397_s23, %s1993_s26 }
  0x17   : > { %p1510_p3 = por %p74_p2, %p73_p1  ;;  %p38_p4 = scmp.ge.s32.totalorder %s1995_s27, 4 }
  0x18   : > { %p1054_p5 = scmp.lt.s32.totalorder %s1405_s25, 8  ;;  %s196_s5 = sand.u32 1, %s1405_s25  }
  0x19   : > { %s1997_s27 = smov (%p38_p4, %s1995_s27), 0  ;;  %s1913_s6 = sand.u32 1, %s1385_s20  }
  0x1a   : > { %1944 = sst [smem:[#allocation21_spill]] %s1997_s27  ;;  %s1521_s7 = ssub.s32 %s1401_s24, %s1997_s27 }
  0x1b   : > { %s1525_s8 = sshll.u32 %s1913_s6, 7  ;;  %s63_s9 = sor.u32 %s62_s29, %s1521_s7 }
  0x1c   : > { %p64_p6 = scmp.eq.s32.totalorder %s63_s9, 0  ;;  %s1915_s10 = sshll.u32 %s1401_s24, 5 }
  0x1d   : > { %s1532_s11 = sadd.s32 %s1397_s23, %s1915_s10  ;;  %s200_s12 = scalar_lea.vmem [#allocation6], %s1525_s8 }
  0x1e   : > { %s208_s13 = sshll.u32 %s200_s12, 4  ;;  %s1916_s26 = sshll.u32 %s1532_s11, 7  ;;  %s1539_s13 = int_to_ptr.vmem [resolvable:$true] %s208_s13 }
  0x1f   : > { %s1536_s14 = scalar_select %p64_p6, %s1385_s20, %s66_s28  }
  0x20   : > { %s1946_s1 = sld [smem:[#allocation25_spill]]  ;;  %p1552_p7 = pnand %p1054_p5, %p1510_p3 }
  0x21   : > { %1945 = sst [smem:[#allocation22_spill]] %s1536_s14  ;;  %s1556_s28 = scalar_lea.sflag [#allocation7], %s196_s5 }
  0x22   : > { %s1947_s29 = scalar_select %p1552_p7, 1, 0 }
  0x23   : > { %p1562_p9 = pneg %p1552_p7 }
  0x25   : > { %s1948_s27 = scalar_select %p1562_p9, 1, 0 }
  0x26   : > { %s1546_s4 = scalar_lea.hbm %s1946_s1, %s1916_s26  ;;  %s1162_s12 = scalar_lea.hbm %s1946_s1, 16384 }
  0x27   : > { %s1157_s9 = scalar_lea.hbm %s1546_s4, 2048  ;;  %p1163_p12 = scmp.lt.u32.totalorder %s1546_s4, %s1946_s1 }
  0x28   : > { %p1158_p8 = scmp.ne.s32.totalorder %s1546_s4, %s1157_s9  ;;  %p1164_p13 = scmp.lt.u32.totalorder %s1162_s12, %s1157_s9 }
  0x29   : > { %p1166_p1 = scmp.lt.u32.totalorder %s1157_s9, %s1546_s4 }
  0x2a   : > { %p1160_p10 = pnand %p1562_p9, %p1158_p8  ;;  %p1165_p0 = por %p1164_p13, %p1163_p12 }
  0x2c   : > { %p1161_p11 = pneg %p1160_p10  ;;  %p1167_p2 = por %p1166_p1, %p1165_p0 }
  0x2e   : > { %p1168_p3 = pnand %p1167_p2, %p1161_p11 }
  0x30   : > { %1171 = shalt.err (!%p1168_p3)
}
  0x31   : > { %s1172_s5 = scalar_lea.vmem %s1539_s13, 2048  ;;  %s1407_s30 = smov [#allocation6]  }
  0x32   : > { %p1173_p4 = scmp.ne.s32.totalorder %s1539_s13, %s1172_s5  ;;  %s1177_s6 = sshll.u32 %s1407_s30, 4  ;;  %s1178_s6 = int_to_ptr.vmem [resolvable:$false] %s1177_s6 }
  0x33   : > { %s1179_s26 = scalar_lea.vmem %s1178_s6, 4096  ;;  %p1180_p8 = scmp.lt.s32.totalorder %s1539_s13, %s1178_s6 }
  0x34   : > { %p1175_p5 = pnand %p1173_p4, %p1562_p9  ;;  %p1181_p10 = scmp.lt.s32.totalorder %s1179_s26, %s1172_s5 }
  0x36   : > { %p1176_p6 = pneg %p1175_p5  ;;  %p1182_p12 = por %p1181_p10, %p1180_p8 }
  0x38   : > { %p1183_p13 = pnand %p1182_p12, %p1176_p6 }
  0x3a   : > { %1186 = shalt.err (!%p1183_p13)
}
  0x3b   : > { %s1917_s10 = smov 256   ;;  %s1918_s9 = smov 128  }
  0x3c   : > { %s1920_s12 = smov 8   ;;  %s1949_s5 = sshll.u32 %s1532_s11, 7 }
  0x3d   : > { %1042 = dma.hbm_to_vmem [thread:$0]  (!%p1552_p7), %s1546_s4, 2048, %s1539_s13, %s1556_s28, %s1917_s10, %s1918_s9, %s1920_s12  }
  0x3e   : > { %s1950_s2 = sld [smem:[#allocation26_spill]]  ;;  %s1597_s1 = sadd.s32 4294967295, %s1405_s25  }
  0x3f   : > { %s768_s14 = sadd.s32 4294967294, %s1405_s25   ;;  %p79_p11 = scmp.ne.s32.totalorder %s1381_s19, %s1377_s18 }
  0x40   : > { %p1924_p0 = scmp.eq.s32.totalorder %s1597_s1, 0  ;;  %p146_p1 = scmp.eq.s32.totalorder %s1521_s7, 0 }
  0x41   : > { %s148_s22 = sadd.s32 1, %s1373_s17  ;;  %p158_p2 = scmp.ne.s32.totalorder %s1373_s17, %s1369_s16 }
  0x42   : > { %p1609_p3 = por %p1924_p0, %p79_p11  ;;  %p159_p4 = scmp.eq.s32.totalorder %s1597_s1, 7 }
  0x43   : > { %s1615_s11 = scalar_select %p146_p1, %s1373_s17, %s148_s22  }
  0x44   : > { %s1594_s26 = scalar_lea.hbm %s1950_s2, %s1949_s5  ;;  %p1617_p5 = por %p159_p4, %p158_p2 }
  0x45   : > { %s1951_s4 = scalar_select %p1609_p3, 1, 0 }
  0x46   : > { %1952 = sst [smem:[#allocation23_spill]] %s1615_s11  ;;  %p164_p6 = scmp.ne.s32.totalorder %s1369_s16, %s1365_s15 }
  0x47   : > { %s1953_s13 = scalar_select %p1617_p5, 1, 0 }
  0x48   : > { %p165_p8 = scmp.eq.s32.totalorder %s768_s14, 7  ;;  %p769_p10 = scmp.ge.s32.totalorder %s1405_s25, 1 }
  0x49   : > { %p172_p12 = scmp.lt.s32.totalorder %s1405_s25, 9  ;;  %s1411_s22 = smov [#allocation3]  }
  0x4a   : > { %p1625_p13 = por %p165_p8, %p164_p6  ;;  %s185_s5 = sshll.u32 %s1411_s22, 4  ;;  %s1633_s5 = int_to_ptr.vmem [resolvable:$true] %s185_s5 }
  0x4b   : > { %p1629_p11 = pnand %p769_p10, %p172_p12  ;;  %s222_s14 = scalar_lea.vmem [#allocation8], %s1525_s8 }
  0x4c   : > { %s1954_s18 = scalar_select %p1625_p13, 1, 0 }
  0x4d   : > { %s1956_s7 = scalar_select %p1629_p11, 1, 0 }
  0x4e   : > { %1955 = sst [smem:[#allocation24_spill]] %s1954_s18  ;;  %p1035_p1 = pneg %p1629_p11 }
  0x4f   : > { %s230_s30 = sshll.u32 %s222_s14, 4  ;;  %s1187_s10 = scalar_lea.hbm %s1594_s26, 2048  ;;  %s1638_s30 = int_to_ptr.vmem [resolvable:$true] %s230_s30 }
  0x50   : > { %p1642_p2 = pnand %p1035_p1, %p1924_p0  ;;  %p1188_p4 = scmp.ne.s32.totalorder %s1594_s26, %s1187_s10 }
  0x51   : > { %s1192_s12 = scalar_lea.hbm %s1950_s2, 16384  ;;  %p1193_p10 = scmp.lt.u32.totalorder %s1594_s26, %s1950_s2 }
  0x52   : > { %s1957_s6 = scalar_select %p1642_p2, 1, 0 }
  0x53   : > { %p1190_p6 = pnand %p1188_p4, %p1562_p9  ;;  %p1194_p12 = scmp.lt.u32.totalorder %s1192_s12, %s1187_s10 }
  0x54   : > { %p1196_p5 = scmp.lt.u32.totalorder %s1187_s10, %s1594_s26 }
  0x55   : > { %p1191_p8 = pneg %p1190_p6  ;;  %p1195_p13 = por %p1194_p12, %p1193_p10 }
  0x57   : > { %p1197_p1 = por %p1196_p5, %p1195_p13 }
  0x59   : > { %p1198_p0 = pnand %p1197_p1, %p1191_p8 }
  0x5b   : > { %1201 = shalt.err (!%p1198_p0)
}
  0x5c   : > { %s1202_s14 = scalar_lea.vmem %s1638_s30, 2048  ;;  %s1412_s9 = smov [#allocation8]  }
  0x5d   : > { %p1203_p4 = scmp.ne.s32.totalorder %s1638_s30, %s1202_s14  ;;  %s1207_s22 = sshll.u32 %s1412_s9, 4  ;;  %s1208_s22 = int_to_ptr.vmem [resolvable:$false] %s1207_s22 }
  0x5e   : > { %s1209_s17 = scalar_lea.vmem %s1208_s22, 4096  ;;  %p1210_p11 = scmp.lt.s32.totalorder %s1638_s30, %s1208_s22 }
  0x5f   : > { %p1205_p6 = pnand %p1203_p4, %p1562_p9  ;;  %p1211_p2 = scmp.lt.s32.totalorder %s1209_s17, %s1202_s14 }
  0x61   : > { %p1206_p3 = pneg %p1205_p6  ;;  %p1212_p10 = por %p1211_p2, %p1210_p11 }
  0x63   : > { %p1213_p12 = pnand %p1212_p10, %p1206_p3 }
  0x65   : > { %1216 = shalt.err (!%p1213_p12)
}
  0x66   : > { %s1958_s10 = smov 8   ;;  %s1959_s12 = smov 128  }
  0x67   : > { %s1960_s11 = smov 256   ;;  %s779_s2 = sshll.u32 %s1397_s23, 4 }
  0x68   : > { %1045 = dma.hbm_to_vmem [thread:$0]  (!%p1552_p7), %s1594_s26, 2048, %s1638_s30, %s1556_s28, %s1960_s11, %s1959_s12, %s1958_s10  }
  0x69   : > { %s1217_s22 = scalar_lea.hbm %s1906_s0, 128  ;;  %p1961_p3 = scmp.ne.s32.totalorder %s1957_s6, 0 }
  0x6a   : > { %p1218_p0 = scmp.ne.s32.totalorder %s1906_s0, %s1217_s22  ;;  %p1224_p2 = scmp.lt.u32.totalorder %s1217_s22, %s1906_s0 }
  0x6b   : > { %p1219_p5 = pneg %p1961_p3 }
  0x6d   : > { %p1220_p13 = pnand %p1219_p5, %p1218_p0 }
  0x6f   : > { %p1221_p11 = pneg %p1220_p13 }
  0x71   : > { %p1226_p8 = pnand %p1224_p2, %p1221_p11 }
  0x73   : > { %1229 = shalt.err (!%p1226_p8)
}
  0x74   : > { %s1230_s28 = scalar_lea.vmem %s1633_s5, 128  ;;  %p1238_p10 = scmp.lt.s32.totalorder %s1633_s5, %s1633_s5 }
  0x75   : > { %p1231_p1 = scmp.ne.s32.totalorder %s1633_s5, %s1230_s28  ;;  %p1239_p12 = scmp.lt.s32.totalorder %s1230_s28, %s1230_s28 }
  0x77   : > { %p1233_p4 = pnand %p1231_p1, %p1219_p5  ;;  %p1240_p7 = por %p1239_p12, %p1238_p10 }
  0x79   : > { %p1234_p6 = pneg %p1233_p4 }
  0x7b   : > { %p1241_p9 = pnand %p1240_p7, %p1234_p6 }
  0x7d   : > { %1244 = shalt.err (!%p1241_p9)
}
  0x7e   : > { %1038 = dma.hbm_to_vmem [thread:$0]  (!%p1961_p3), %s1906_s0, 128, %s1633_s5, [#allocation4]  }
  0x7f   : > { %s1962_s26 = sshll.u32 %s1401_s24, 5  ;;  %s244_s30 = scalar_lea.vmem [#allocation9], %s1525_s8 }
  0x80   : > { %s250_s18 = sadd.s32 %s779_s2, %s1962_s26  ;;  %s253_s11 = sshll.u32 %s244_s30, 4  ;;  %s1696_s11 = int_to_ptr.vmem [resolvable:$true] %s253_s11 }
  0x81   : > { %s781_s9 = sshll.u32 %s250_s18, 7  ;;  %s1963_s17 = sand.u32 1, %s1385_s20  }
  0x82   : > { %s1701_s6 = scalar_lea.hbm %s1909_s3, %s781_s9  ;;  %s1705_s28 = scalar_lea.sflag [#allocation10], %s1963_s17 }
  0x83   : > { %s1245_s5 = scalar_lea.hbm %s1701_s6, 2048  ;;  %p1964_p9 = scmp.ne.s32.totalorder %s1948_s27, 0 }
  0x84   : > { %p1246_p7 = scmp.ne.s32.totalorder %s1701_s6, %s1245_s5  ;;  %s1250_s15 = scalar_lea.hbm %s1909_s3, 16384 }
  0x85   : > { %p1251_p5 = scmp.lt.u32.totalorder %s1701_s6, %s1909_s3  ;;  %p1252_p13 = scmp.lt.u32.totalorder %s1250_s15, %s1245_s5 }
  0x86   : > { %p1248_p0 = pnand %p1246_p7, %p1964_p9  ;;  %p1254_p2 = scmp.lt.u32.totalorder %s1245_s5, %s1701_s6 }
  0x87   : > { %p1253_p11 = por %p1252_p13, %p1251_p5 }
  0x88   : > { %p1249_p3 = pneg %p1248_p0 }
  0x89   : > { %p1255_p8 = por %p1254_p2, %p1253_p11 }
  0x8b   : > { %p1256_p1 = pnand %p1255_p8, %p1249_p3 }
  0x8d   : > { %1259 = shalt.err (!%p1256_p1)
}
  0x8e   : > { %s1260_s18 = scalar_lea.vmem %s1696_s11, 2048  ;;  %s1413_s30 = smov [#allocation9]  }
  0x8f   : > { %p1261_p4 = scmp.ne.s32.totalorder %s1696_s11, %s1260_s18  ;;  %s1265_s9 = sshll.u32 %s1413_s30, 4  ;;  %s1266_s9 = int_to_ptr.vmem [resolvable:$false] %s1265_s9 }
  0x90   : > { %s1267_s22 = scalar_lea.vmem %s1266_s9, 4096  ;;  %p1268_p12 = scmp.lt.s32.totalorder %s1696_s11, %s1266_s9 }
  0x91   : > { %p1263_p6 = pnand %p1261_p4, %p1964_p9  ;;  %p1269_p7 = scmp.lt.s32.totalorder %s1267_s22, %s1260_s18 }
  0x93   : > { %p1264_p10 = pneg %p1263_p6  ;;  %p1270_p0 = por %p1269_p7, %p1268_p12 }
  0x95   : > { %p1271_p5 = pnand %p1270_p0, %p1264_p10 }
  0x97   : > { %1274 = shalt.err (!%p1271_p5)
}
  0x98   : > { %p1965_p3 = scmp.ne.s32.totalorder %s1947_s29, 0  ;;  %p1966_p9 = scmp.ne.s32.totalorder %s1956_s7, 0 }
  0x99   : > { %p1967_p13 = scmp.eq.s32.totalorder (!%p1966_p9), %s1597_s1, 0 }
  0x9a   : > { %1048 = dma.hbm_to_vmem [thread:$0]  (!%p1965_p3), %s1701_s6, 2048, %s1696_s11, %s1705_s28, %s1959_s12, %s1959_s12, %s1958_s10  }
  0x9b   : > { %265 = sbr.rel (%p1966_p9) target bundleno = 706 (0x2c2), region = 36 }
  0xa2   : > { %1348 = dma.done.wait (%p1967_p13), [#allocation4], 128   ;;  %p1968_p11 = pmov %p1967_p13 }
  0xa3   : > { %s271_s29 = sand.u32 1, %s1597_s1   ;;  %s273_s27 = sand.u32 1, %s1381_s19  }
  0xa4   : > { %1350 = vsyncadd (%p1968_p11), [#allocation4], 4294967168  ;;  %s784_s14 = sshll.u32 %s273_s27, 7  ;;  %s272_s17 = scalar_lea.sflag [#allocation7], %s271_s29 }
  0xa5   : > { %s1740_s5 = scalar_lea.vmem [#allocation6], %s784_s14  ;;  %p1969_p2 = scmp.ne.s32.totalorder %s1951_s4, 0 }
  0xa7   : > { %1352 = dma.done.wait (%p1969_p2), %s272_s17, 4096  }
  0xa8   : > { %1354 = vsyncadd (%p1969_p2), %s272_s17, 4294963200  ;;  %s1746_s7 = scalar_lea.vmem [#allocation8], %s784_s14  ;;  %s290_s10 = scalar_lea.sflag [#allocation10], %s273_s27 }
  0xa9   : > { %s1748_s12 = scalar_lea.vmem [#allocation9], %s784_s14 }
  0xaa   : > { %1356 = dma.done.wait (%p1969_p2), %s290_s10, 2048  }
  0xab   : > { %1358 = vsyncadd (%p1969_p2), %s290_s10, 4294965248  ;;  %s325_s1 = sand.u32 1, %s1369_s16   ;;  %p788_p8 = scmp.ne.s32.totalorder %s1389_s21, 0 }
  0xac   : > { %s1757_s11 = sshll.u32 %s325_s1, 3  ;;  %v1414_v0 = vmov (!%p788_p8), 0.0  }
  0xad   : > { %s327_s6 = scalar_lea.vmem [#allocation11], %s1757_s11  ;;  %332 = sbr.rel (%p788_p8) target bundleno = 180 (0xb4), region = 56  ;;  %333 = vst [vmem:[#allocation2] sm:$0xff] (!%p788_p8), %v1414_v0 }
  0xb4 PF: > { %v335_v1 = vld [vmem:[%s1740_s5] sm:$0xff]  ;;  %v336_v2 = vld [vmem:[%s1740_s5 + $0x8] sm:$0xff]  ;;  %v337_v3 = vld [vmem:[%s1740_s5 + $0x10] sm:$0xff]  ;;  %v1415_v4 = vmov 0.0|0.0   ;;  %vm1416_vm0 = vmmov 0   ;;  %v1417_v7 = vmov 0.0  }
  0xb5   : > { %951 = vmatprep.subr.bf16.mxu0 %v1415_v4  ;;  %v952_v5 = vpack.c.bf16 %v336_v2, %v335_v1  ;;  %v338_v6 = vld [vmem:[%s1740_s5 + $0x18] sm:$0xff]  ;;  %975 = vmatprep.subr.bf16.mxu1 %v1415_v4  ;;  %v339_v9 = vld [vmem:[%s1740_s5 + $0x20] sm:$0xff]  ;;  %v340_v10 = vld [vmem:[%s1740_s5 + $0x28] sm:$0xff]  ;;  %p790_p1 = scmp.ne.s32.totalorder %s1389_s21, 1 }
  0xb6   : > { %878 = vmatprep.mubr.msk.f32.mxu0 %vm1416_vm0, %v1417_v7  ;;  %913 = vmatprep.mubr.msk.f32.mxu1 %vm1416_vm0, %v1417_v7  ;;  %v955_v8 = vpack.c.bf16 %v338_v6, %v337_v3  ;;  %v351_v11 = vld [vmem:[%s1746_s7] sm:$0xff]  ;;  %v352_v12 = vld [vmem:[%s1746_s7 + $0x8] sm:$0xff]  ;;  %v353_v14 = vld [vmem:[%s1746_s7 + $0x10] sm:$0xff]  ;;  %v958_v16 = vpack.c.bf16 %v340_v10, %v339_v9 }
  0xb7   : > { %953 = vmatpush3.bf16.msra.mxu0 %v952_v5  ;;  %v976_v13 = vpack.c.bf16 %v352_v12, %v351_v11  ;;  %v354_v15 = vld [vmem:[%s1746_s7 + $0x18] sm:$0xff]  ;;  %v341_v17 = vld [vmem:[%s1740_s5 + $0x30] sm:$0xff]  ;;  %v355_v20 = vld [vmem:[%s1746_s7 + $0x20] sm:$0xff] }
  0xb8   : > { %954 = vmatprep.subr.bf16.mxu0 %v1415_v4  ;;  %v342_v18 = vld [vmem:[%s1740_s5 + $0x38] sm:$0xff]  ;;  %v979_v19 = vpack.c.bf16 %v354_v15, %v353_v14  ;;  %v356_v21 = vld [vmem:[%s1746_s7 + $0x28] sm:$0xff]  ;;  %v343_v23 = vld [vmem:[%s1740_s5 + $0x40] sm:$0xff] }
  0xb9   : > { %977 = vmatpush3.bf16.msra.mxu1 %v976_v13  ;;  %v961_v22 = vpack.c.bf16 %v342_v18, %v341_v17  ;;  %v344_v24 = vld [vmem:[%s1740_s5 + $0x48] sm:$0xff]  ;;  %v982_v25 = vpack.c.bf16 %v356_v21, %v355_v20  ;;  %v357_v26 = vld [vmem:[%s1746_s7 + $0x30] sm:$0xff]  ;;  %v358_v27 = vld [vmem:[%s1746_s7 + $0x38] sm:$0xff] }
  0xba   : > { %978 = vmatprep.subr.bf16.mxu1 %v1415_v4  ;;  %v964_v28 = vpack.c.bf16 %v344_v24, %v343_v23  ;;  %v345_v29 = vld [vmem:[%s1740_s5 + $0x50] sm:$0xff]  ;;  %v346_v30 = vld [vmem:[%s1740_s5 + $0x58] sm:$0xff]  ;;  %v985_v31 = vpack.c.bf16 %v358_v27, %v357_v26  ;;  %v359_v32 = vld [vmem:[%s1746_s7 + $0x40] sm:$0xff] }
  0xbb   : > { %956 = vmatpush3.bf16.msra.mxu0 %v955_v8  ;;  %v360_v33 = vld [vmem:[%s1746_s7 + $0x48] sm:$0xff]  ;;  %v967_v34 = vpack.c.bf16 %v346_v30, %v345_v29  ;;  %v347_v35 = vld [vmem:[%s1740_s5 + $0x60] sm:$0xff]  ;;  %v361_v38 = vld [vmem:[%s1746_s7 + $0x50] sm:$0xff] }
  0xbc   : > { %957 = vmatprep.subr.bf16.mxu0 %v1415_v4  ;;  %v348_v36 = vld [vmem:[%s1740_s5 + $0x68] sm:$0xff]  ;;  %v988_v37 = vpack.c.bf16 %v360_v33, %v359_v32  ;;  %v362_v39 = vld [vmem:[%s1746_s7 + $0x58] sm:$0xff]  ;;  %v349_v41 = vld [vmem:[%s1740_s5 + $0x70] sm:$0xff] }
  0xbd   : > { %980 = vmatpush3.bf16.msra.mxu1 %v979_v19  ;;  %v970_v40 = vpack.c.bf16 %v348_v36, %v347_v35  ;;  %v350_v42 = vld [vmem:[%s1740_s5 + $0x78] sm:$0xff]  ;;  %v991_v43 = vpack.c.bf16 %v362_v39, %v361_v38  ;;  %v363_v44 = vld [vmem:[%s1746_s7 + $0x60] sm:$0xff]  ;;  %v364_v45 = vld [vmem:[%s1746_s7 + $0x68] sm:$0xff] }
  0xbe   : > { %981 = vmatprep.subr.bf16.mxu1 %v1415_v4  ;;  %v973_v46 = vpack.c.bf16 %v350_v42, %v349_v41  ;;  %v994_v47 = vpack.c.bf16 %v364_v45, %v363_v44  ;;  %v365_v48 = vld [vmem:[%s1746_s7 + $0x70] sm:$0xff]  ;;  %v366_v49 = vld [vmem:[%s1746_s7 + $0x78] sm:$0xff]  ;;  %v367_v52 = vld [vmem:[%s1748_s12] sm:$0xff] }
  0xbf   : > { %959 = vmatpush3.bf16.msra.mxu0 %v958_v16  ;;  %v334_v50 = vld [vmem:[#allocation3] sm:$0xff]  ;;  %v997_v51 = vpack.c.bf16 %v366_v49, %v365_v48  ;;  %v368_v53 = vld [vmem:[%s1748_s12 + $0x8] sm:$0xff]  ;;  %v369_v55 = vld [vmem:[%s1748_s12 + $0x10] sm:$0xff] }
  0xc0   : > { %960 = vmatprep.subr.bf16.mxu0 %v1415_v4  ;;  %v1000_v54 = vpack.c.bf16 %v368_v53, %v367_v52  ;;  %v370_v56 = vld [vmem:[%s1748_s12 + $0x18] sm:$0xff]  ;;  %v371_v58 = vld [vmem:[%s1748_s12 + $0x20] sm:$0xff]  ;;  %v372_v59 = vld [vmem:[%s1748_s12 + $0x28] sm:$0xff] }
  0xc1   : > { %983 = vmatpush3.bf16.msra.mxu1 %v982_v25  ;;  %v1003_v57 = vpack.c.bf16 %v370_v56, %v369_v55  ;;  %v1006_v60 = vpack.c.bf16 %v372_v59, %v371_v58  ;;  %v373_v61 = vld [vmem:[%s1748_s12 + $0x30] sm:$0xff]  ;;  %v374_v62 = vld [vmem:[%s1748_s12 + $0x38] sm:$0xff]  ;;  %v375_v0 = vld [vmem:[%s1748_s12 + $0x40] sm:$0xff] }
  0xc2   : > { %984 = vmatprep.subr.bf16.mxu1 %v1415_v4  ;;  %v1009_v63 = vpack.c.bf16 %v374_v62, %v373_v61  ;;  %v376_v1 = vld [vmem:[%s1748_s12 + $0x48] sm:$0xff]  ;;  %v377_v3 = vld [vmem:[%s1748_s12 + $0x50] sm:$0xff]  ;;  %v378_v5 = vld [vmem:[%s1748_s12 + $0x58] sm:$0xff] }
  0xc3   : > { %962 = vmatpush3.bf16.msra.mxu0 %v961_v22  ;;  %v1012_v2 = vpack.c.bf16 %v376_v1, %v375_v0  ;;  %v1015_v6 = vpack.c.bf16 %v378_v5, %v377_v3  ;;  %v380_v8 = vld [vmem:[%s1748_s12 + $0x68] sm:$0xff]  ;;  %v381_v10 = vld [vmem:[%s1748_s12 + $0x70] sm:$0xff]  ;;  %v382_v11 = vld [vmem:[%s1748_s12 + $0x78] sm:$0xff] }
  0xc4   : > { %963 = vmatprep.subr.bf16.mxu0 %v1415_v4  ;;  %v1021_v12 = vpack.c.bf16 %v382_v11, %v381_v10  ;;  %v531_v23 = vld [vmem:[#allocation2] sm:$0xff] }
  0xc5   : > { %986 = vmatpush3.bf16.msra.mxu1 %v985_v31 }
  0xc6   : > { %987 = vmatprep.subr.bf16.mxu1 %v1415_v4 }
  0xc7   : > { %965 = vmatpush3.bf16.msra.mxu0 %v964_v28 }
  0xc8   : > { %966 = vmatprep.subr.bf16.mxu0 %v1415_v4 }
  0xc9   : > { %989 = vmatpush3.bf16.msra.mxu1 %v988_v37 }
  0xca   : > { %990 = vmatprep.subr.bf16.mxu1 %v1415_v4 }
  0xcb   : > { %968 = vmatpush3.bf16.msra.mxu0 %v967_v34 }
  0xcc   : > { %969 = vmatprep.subr.bf16.mxu0 %v1415_v4 }
  0xcd   : > { %992 = vmatpush3.bf16.msra.mxu1 %v991_v43 }
  0xce   : > { %993 = vmatprep.subr.bf16.mxu1 %v1415_v4 }
  0xcf   : > { %971 = vmatpush3.bf16.msra.mxu0 %v970_v40 }
  0xd0   : > { %972 = vmatprep.subr.bf16.mxu0 %v1415_v4 }
  0xd1   : > { %995 = vmatpush3.bf16.msra.mxu1 %v994_v47 }
  0xd2   : > { %996 = vmatprep.subr.bf16.mxu1 %v1415_v4 }
  0xd3   : > { %974 = vmatpush3.bf16.msra.mxu0 %v973_v46 }
  0xd4   : > { %999 = vmatprep.subr.bf16.mxu0 %v1415_v4 }
  0xd5   : > { %998 = vmatpush3.bf16.msra.mxu1 %v997_v51 }
  0xd6   : > { %879 = vmatmul.mubr.f32.vlgmr.msra.gmra.mrb[0].mxu0 %v334_v50 }
  0xd7   : > { %948 = vmatprep.mubr.msk.f32.mxu0 %vm1416_vm0, %v1417_v7  ;;  %1001 = vmatpush3.bf16.msra.mxu0 %v1000_v54  ;;  %v379_v7 = vld [vmem:[%s1748_s12 + $0x60] sm:$0xff] }
  0xd8   : > { %914 = vmatmul.mubr.f32.vlgmr.msra.gmra.mrb[0].mxu1 %v334_v50  ;;  %1002 = vmatprep.subr.bf16.mxu0 %v1415_v4  ;;  %v1018_v9 = vpack.c.bf16 %v380_v8, %v379_v7 }
  0xdb   : > { %1004 = vmatpush3.bf16.msra.mxu0 %v1003_v57 }
  0xdc   : > { %1005 = vmatprep.subr.bf16.mxu0 %v1415_v4 }
  0xdf   : > { %1007 = vmatpush3.bf16.msra.mxu0 %v1006_v60 }
  0xe0   : > { %1008 = vmatprep.subr.bf16.mxu0 %v1415_v4 }
  0xe3   : > { %1010 = vmatpush3.bf16.msra.mxu0 %v1009_v63 }
  0xe4   : > { %1011 = vmatprep.subr.bf16.mxu0 %v1415_v4 }
  0xe7   : > { %1013 = vmatpush3.bf16.msra.mxu0 %v1012_v2 }
  0xe8   : > { %1014 = vmatprep.subr.bf16.mxu0 %v1415_v4 }
  0xeb   : > { %1016 = vmatpush3.bf16.msra.mxu0 %v1015_v6 }
  0xec   : > { %1017 = vmatprep.subr.bf16.mxu0 %v1415_v4 }
  0xef   : > { %1019 = vmatpush3.bf16.msra.mxu0 %v1018_v9 }
  0xf0   : > { %1020 = vmatprep.subr.bf16.mxu0 %v1415_v4 }
  0xf3   : > { %1022 = vmatpush3.bf16.msra.mxu0 %v1021_v12 }
 0x1a9   : > { %v449_v13 = vpop.f32.mrb[0].mxu0 }
 0x1aa   : > { %v789_v14 = vmul.f32 -1.442695, %v449_v13  ;;  %v880_v15 = vpop.f32.mrb[1].mxu0 }
 0x1ab   : > { %v526_v16 = vpop.f32.mrb[0].mxu1 }
 0x1ac   : > { %1153 = vpow2.f32 %v789_v14  ;;  %v915_v17 = vpop.f32.mrb[1].mxu1 }
 0x1b6   : > { %v1154_v18 = vpop.eup %1153 }
 0x1b7   : > { %v456_v19 = vadd.f32 1.0, %v1154_v18 }
 0x1b9   : > { %1155 = vrcp.f32 %v456_v19 }
 0x1c3   : > { %v1156_v20 = vpop.eup %1155 }
 0x1c4   : > { %v459_v21 = vmul.f32 %v1156_v20, %v449_v13 }
 0x1c6   : > { %v530_v22 = vmul.f32 %v526_v16, %v459_v21 }
 0x1c8   : > { %949 = vmatmul.mubr.f32.vlgmr.msra.gmra.mrb[2].mxu0 %v530_v22 }
 0x298   : > { %607 = sbr.rel (%p790_p1) target bundleno = 679 (0x2a7), region = 60 }
 0x29b   : > { %v598_v24 = vpop.f32.mrb[2].mxu0 }
 0x29c   : > { %v602_v4 = vadd.f32 %v598_v24, %v531_v23  ;;  %v950_v25 = vpop.f32.mrb[3].mxu0 }
 0x29e   : > { %603 = vst [vmem:[#allocation2] sm:$0xff] %v602_v4 }
 0x2a5   : > { %v608_v26 = vld [vmem:[#allocation2] sm:$0xff] }
 0x2a6   : > { %609 = vst [vmem:[%s327_s6] sm:$0xff] %v608_v26 }
 0x2a7 PF: > { %s1970_s4 = sld [smem:[#allocation18_spill]]  ;;  %s1971_s15 = sld [smem:[#allocation27_spill]] }
 0x2a8   : > { %s624_s18 = sshll.u32 %s327_s6, 4  ;;  %s611_s21 = scalar_lea.sflag [#allocation5], %s325_s1  ;;  %s625_s18 = int_to_ptr.vmem [resolvable:$true] %s624_s18 }
 0x2a9   : > { %s1275_s30 = scalar_lea.vmem %s625_s18, 128  ;;  %p1973_p6 = scmp.ne.s32.totalorder %s1953_s13, 0 }
 0x2aa   : > { %p1276_p4 = scmp.ne.s32.totalorder %s625_s18, %s1275_s30  ;;  %s1418_s9 = smov [#allocation11]  }
 0x2ab   : > { %s1279_s22 = sshll.u32 %s1418_s9, 4  ;;  %s1280_s22 = int_to_ptr.vmem [resolvable:$false] %s1279_s22 }
 0x2ac   : > { %p1277_p10 = pnand %p1276_p4, %p1973_p6  ;;  %s1281_s29 = scalar_lea.vmem %s1280_s22, 256 }
 0x2ad   : > { %s792_s28 = sshll.u32 %s1970_s4, 7  ;;  %s1972_s26 = smov %s1971_s15 }
 0x2ae   : > { %s1846_s25 = scalar_lea.hbm %s1971_s15, %s792_s28  ;;  %p1278_p12 = pneg %p1277_p10 }
 0x2af   : > { %p1282_p7 = scmp.lt.s32.totalorder %s625_s18, %s1280_s22  ;;  %p1283_p0 = scmp.lt.s32.totalorder %s1281_s29, %s1275_s30 }
 0x2b1   : > { %p1284_p5 = por %p1283_p0, %p1282_p7 }
 0x2b3   : > { %p1285_p3 = pnand %p1284_p5, %p1278_p12 }
 0x2b5   : > { %1288 = shalt.err (!%p1285_p3)
}
 0x2b6   : > { %s1289_s27 = scalar_lea.hbm %s1846_s25, 128  ;;  %s1293_s5 = scalar_lea.hbm %s1972_s26, 512 }
 0x2b7   : > { %p1290_p9 = scmp.ne.s32.totalorder %s1846_s25, %s1289_s27  ;;  %p1294_p2 = scmp.lt.u32.totalorder %s1846_s25, %s1972_s26 }
 0x2b8   : > { %p1295_p8 = scmp.lt.u32.totalorder %s1293_s5, %s1289_s27  ;;  %p1297_p4 = scmp.lt.u32.totalorder %s1289_s27, %s1846_s25 }
 0x2b9   : > { %p1291_p13 = pnand %p1290_p9, %p1973_p6 }
 0x2ba   : > { %p1296_p1 = por %p1295_p8, %p1294_p2 }
 0x2bb   : > { %p1292_p11 = pneg %p1291_p13 }
 0x2bc   : > { %p1298_p10 = por %p1297_p4, %p1296_p1 }
 0x2be   : > { %p1299_p12 = pnand %p1298_p10, %p1292_p11 }
 0x2c0   : > { %1302 = shalt.err (!%p1299_p12)
}
 0x2c1   : > { %1033 = dma.vmem_to_hbm [thread:$0]  (%p1973_p6), %s625_s18, 128, %s1846_s25, %s611_s21  }
 0x2c2 PF: > { %s1974_s12 = sld [smem:[#allocation19_spill]]  ;;  %s1975_s1 = sld [smem:[#allocation16_spill]] }
 0x2c3   : > { %s1976_s11 = sld [smem:[#allocation24_spill]] }
 0x2c8   : > { %p1056_p7 = scmp.ge.s32.totalorder %s1974_s12, 2  ;;  %s636_s6 = sand.u32 1, %s1975_s1  }
 0x2c9   : > { %p1977_p0 = scmp.ne.s32.totalorder %s1976_s11, 0  ;;  %s637_s4 = scalar_lea.sflag [#allocation5], %s636_s6 }
 0x2cb   : > { %p1050_p5 = pnand %p1056_p7, %p1977_p0 }
 0x2cd   : > { %1360 = dma.done.wait (!%p1050_p5), %s637_s4, 128  }
 0x2ce   : > { %1362 = vsyncadd (!%p1050_p5), %s637_s4, 4294967168  ;;  %s24_s25 = sadd.s32 1, %s1974_s12   ;;  %s1978_s28 = sld [smem:[#allocation17_spill]] }
 0x2cf   : > { %p21_p3 = scmp.ge.s32.totalorder %s24_s25, 10   ;;  %s1979_s17 = sld [smem:[#allocation23_spill]] }
 0x2d0   : > { %s1980_s13 = sld [smem:[#allocation22_spill]]  ;;  %s1981_s2 = sld [smem:[#allocation20_spill]] }
 0x2d1   : > { %s1982_s8 = sld [smem:[#allocation21_spill]]  ;;  %s1983_s15 = smov %s1369_s16 }
 0x2d2   : > { %s1985_s18 = smov %s1381_s19  ;;  %s1986_s19 = smov %s1385_s20 }
 0x2d3   : > { %s1988_s21 = smov %s1397_s23  ;;  %s1989_s22 = smov %s1401_s24 }
 0x2d4   : > { %s1984_s16 = smov %s1978_s28  ;;  %23 = sbr.rel (!%p21_p3) target bundleno = 16 (0x10), region = 118 }
 0x2d6   : > { %s1987_s20 = smov %s1980_s13  ;;  %s1990_s23 = smov %s1981_s2 }
 0x2d7   : > { %s1991_s24 = smov %s1982_s8 }
 0x2db   :  { %642 = vsyncpa [#allocation4], 1 }
 0x2dc   :  { %644 = vsyncpa [#allocation4 + $0x1], 1 }
 0x2dd   :  { %645 = vsyncpa [#allocation7], 1 }
 0x2de   :  { %647 = vsyncpa [#allocation7 + $0x1], 1 }
 0x2df   :  { %648 = vsyncpa [#allocation10], 1 }
 0x2e0   :  { %650 = vsyncpa [#allocation10 + $0x1], 1 }
 0x2e1   :  { %651 = vsyncpa [#allocation5], 1 }
 0x2e2   :  { %653 = vsyncpa [#allocation5 + $0x1], 1 }

</bundles_post_ra>
